<compile_context>
chip_gen: v6e
topology: v6e:2x2x1
jax: 0.10.0
libtpu: 0.0.40
codegen_flags: <defaults>
</compile_context>

<pallas_src>
import functools
import math

import jax
import jax.numpy as jnp
from jax.experimental import pallas as pl
from jax.experimental.pallas import tpu as pltpu


def _arcface_kernel(*refs, s, cos_m, sin_m, training, fold_s,
                    normalize_weight, tc):
    """One (tb, tc) output tile.  Grid = (class tiles, batch tiles)."""
    if training:
        x_ref, y_ref, w_ref, o_ref, *scratch = refs
    else:
        x_ref, w_ref, o_ref, *scratch = refs
        y_ref = None

    if normalize_weight:
        # Weight tile arrives raw; normalize it ONCE per class tile (the tile
        # is resident across the whole inner batch axis) into a compute-dtype
        # VMEM scratch.  Inner grid axis is "arbitrary" so this guard is safe
        # under megacore sharding of the outer (class) axis.
        wn_ref = scratch[0]

        @pl.when(pl.program_id(1) == 0)
        def _():
            w32 = w_ref[...].astype(jnp.float32)
            inv = jax.lax.rsqrt(
                jnp.maximum(jnp.sum(w32 * w32, axis=1, keepdims=True), 1e-24))
            wn_ref[...] = (w32 * inv).astype(wn_ref.dtype)

        w = wn_ref[...]
    else:
        w = w_ref[...]          # already normalized (and cast) in the wrapper

    # xs tile is already L2-normalized (and, if fold_s, pre-scaled by s) and
    # cast to the MXU operand dtype in the wrapper.
    x = x_ref[...]
    logits = jax.lax.dot_general(
        x.astype(w.dtype), w, (((1,), (1,)), ((), ())),
        preferred_element_type=jnp.float32)            # (tb, tc) f32 accum

    if not training:
        o_ref[...] = logits.astype(o_ref.dtype)
        return

    tb_, tc_ = logits.shape
    col0 = pl.program_id(0) * tc                       # global column offset
    col_ids = jax.lax.broadcasted_iota(jnp.int32, (tb_, tc_), 1)
    mask = col_ids == (y_ref[...] - col0)              # (tb,1) op, not (tb,tc)

    # Target logit per row (0 if the target class lives in another class
    # tile); all margin math stays on the (tb, 1) vector.
    t_tgt = jnp.sum(jnp.where(mask, logits, 0.0), axis=1, keepdims=True)
    if fold_s:
        # logits are already scaled by s (exact: s is a power of two).
        t = jnp.clip(t_tgt * (1.0 / s), -1.0, 1.0)
        margined = s * (t * cos_m
                        - sin_m * jnp.sqrt(jnp.maximum(1.0 - t * t, 0.0)))
        delta = margined - t_tgt
        o_ref[...] = (logits + jnp.where(mask, delta, 0.0)).astype(o_ref.dtype)
    else:
        t = jnp.clip(t_tgt, -1.0, 1.0)
        margined = t * cos_m - sin_m * jnp.sqrt(jnp.maximum(1.0 - t * t, 0.0))
        delta = margined - t_tgt
        o_ref[...] = (s * (logits + jnp.where(mask, delta, 0.0))
                      ).astype(o_ref.dtype)


def arcface_margin(xs, ys, weight, *, s=64.0, m=0.3, training=True,
                   tb=512, tc=2048, compute_dtype=jnp.bfloat16,
                   out_dtype=jnp.float32, prenormalize_weight=False,
                   vmem_limit_bytes=None):
    """Pallas implementation of ArcfaceMargin.forward.

    xs: (B, E) embeddings, ys: (B,) int labels (ignored / may be None in eval
    mode), weight: (C, E) class weights.
    compute_dtype: MXU operand dtype (bf16 default — kernel is HBM-bound).
    prenormalize_weight: normalize weight once in the wrapper and stream it in
      compute_dtype (best for frozen / reused weights); default False streams
      the raw weight and normalizes a (tc, E) tile in-kernel once per class
      tile (best for weights that change every training step).
    """
    B, E = xs.shape
    C, E2 = weight.shape
    assert E == E2

    tb = min(tb, B)
    tc = min(tc, C)
    if tb < B:
        assert tb % 8 == 0, "batch tile must be a multiple of 8 when B is tiled"
    if tc < C:
        assert tc % 128 == 0, "class tile must be a multiple of 128 when C is tiled"

    nb = -(-B // tb)
    nc = -(-C // tc)
    Bp, Cp = nb * tb, nc * tc

    s = float(s)
    # Fold s into xs when it is an exact power of two (64.0 is): removes the
    # final full-tile multiply; exact because pow2 scaling only shifts the
    # exponent.
    fold_s = bool(training and s > 0.0 and math.frexp(s)[0] == 0.5)

    # --- xs: L2-normalize (F.normalize eps=1e-12 semantics), fold s, cast ---
    x32 = xs.astype(jnp.float32)
    xn = x32 * jax.lax.rsqrt(
        jnp.maximum(jnp.sum(x32 * x32, axis=1, keepdims=True), 1e-24))
    if fold_s:
        xn = xn * s
    xn = xn.astype(compute_dtype)

    # --- weight: either pre-normalize once (frozen weights) or stream raw ---
    if prenormalize_weight:
        w32 = weight.astype(jnp.float32)
        w_in = (w32 * jax.lax.rsqrt(
            jnp.maximum(jnp.sum(w32 * w32, axis=1, keepdims=True), 1e-24))
                ).astype(compute_dtype)
    else:
        w_in = weight
    # TODO(synk): optional fp8 (E4M3) weight operand on v7x for another 2x on
    # the weight stream — needs downstream accuracy validation.

    if training:
        ys2 = ys.reshape(B, 1).astype(jnp.int32)
    else:
        ys2 = None

    if Bp != B:
        xn = jnp.pad(xn, ((0, Bp - B), (0, 0)))
        if training:
            ys2 = jnp.pad(ys2, ((0, Bp - B), (0, 0)))
    if Cp != C:
        w_in = jnp.pad(w_in, ((0, Cp - C), (0, 0)))

    cb = jnp.dtype(compute_dtype).itemsize
    wb = jnp.dtype(w_in.dtype).itemsize
    ob = jnp.dtype(out_dtype).itemsize

    # VMEM budget: double-buffered tiles + scratch + ~4 MiB headroom for
    # compiler internals / lane padding; request estimate * 1.5, never the
    # full 64 MiB v7x per-TC VMEM.
    vmem_est = (2 * tb * E * cb                      # xs tiles
                + 2 * tc * E * wb                    # weight tiles
                + 2 * tb * tc * ob                   # output tiles
                + (tc * E * cb if not prenormalize_weight else 0)   # wn scratch
                + (2 * tb * 128 * 4 if training else 0)             # ys tiles
                + (4 << 20))
    if vmem_limit_bytes is None:
        vmem_limit_bytes = int(min(vmem_est * 1.5, 56 << 20))

    kernel = functools.partial(
        _arcface_kernel,
        s=s, cos_m=float(math.cos(m)), sin_m=float(math.sin(m)),
        training=training, fold_s=fold_s,
        normalize_weight=not prenormalize_weight, tc=tc)

    # Class tiles on the OUTER axis: the (tc, E) weight tile's block index is
    # constant across the inner batch axis, so it is fetched from HBM only
    # once per class tile; the much smaller xs / ys tiles are re-streamed.
    if training:
        in_specs = [
            pl.BlockSpec((tb, E), lambda jc, ib: (ib, 0)),   # xs tile
            pl.BlockSpec((tb, 1), lambda jc, ib: (ib, 0)),   # ys tile
            pl.BlockSpec((tc, E), lambda jc, ib: (jc, 0)),   # weight tile
        ]
        args = (xn, ys2, w_in)
    else:
        in_specs = [
            pl.BlockSpec((tb, E), lambda jc, ib: (ib, 0)),
            pl.BlockSpec((tc, E), lambda jc, ib: (jc, 0)),
        ]
        args = (xn, w_in)

    scratch_shapes = ([pltpu.VMEM((tc, E), compute_dtype)]
                      if not prenormalize_weight else [])
    # The in-kernel weight normalization is guarded by program_id(1)==0, so
    # the inner (batch) axis must be sequential ("arbitrary") on that path.
    dim_sems = (("parallel", "arbitrary") if not prenormalize_weight
                else ("parallel", "parallel"))

    cost = pl.CostEstimate(
        flops=int(2 * Bp * Cp * E),
        transcendentals=0,
        bytes_accessed=int(nc * Bp * E * cb + Cp * E * wb + Bp * Cp * ob
                           + (Bp * 4 if training else 0)))

    out = pl.pallas_call(
        kernel,
        out_shape=jax.ShapeDtypeStruct((Bp, Cp), out_dtype),
        grid_spec=pltpu.PrefetchScalarGridSpec(
            num_scalar_prefetch=0,
            grid=(nc, nb),
            in_specs=in_specs,
            out_specs=pl.BlockSpec((tb, tc), lambda jc, ib: (ib, jc)),
            scratch_shapes=scratch_shapes,
        ),
        compiler_params=pltpu.CompilerParams(
            dimension_semantics=dim_sems,
            vmem_limit_bytes=vmem_limit_bytes),
        cost_estimate=cost,
    )(*args)

    if Bp != B or Cp != C:
        out = out[:B, :C]
    return out


def _reference(xs, ys, weight, s, m, training):
    xn = xs / jnp.maximum(jnp.linalg.norm(xs, axis=1, keepdims=True), 1e-12)
    wn = weight / jnp.maximum(jnp.linalg.norm(weight, axis=1, keepdims=True), 1e-12)
    logits = xn @ wn.T
    if not training:
        return logits
    tgt = jnp.take_along_axis(logits, ys[:, None], axis=1)
    new = jnp.cos(jnp.arccos(jnp.clip(tgt, -1.0, 1.0)) + m)
    mask = jnp.arange(logits.shape[1])[None, :] == ys[:, None]
    return jnp.where(mask, new, logits) * s


if __name__ == "__main__":
    key = jax.random.PRNGKey(0)
    kx, kw, ky, kw2 = jax.random.split(key, 4)
    s, m = 64.0, 0.3

    # Case 1: small shapes consistent with the module (single tile per axis),
    # f32 MXU operands for a tight-tolerance check of the math (in-kernel
    # weight normalization + folded s, since s=64 is a power of two).
    B, E, C = 16, 32, 16
    xs = jax.random.normal(kx, (B, E), dtype=jnp.float32)
    ys = jax.random.randint(ky, (B,), 0, C, dtype=jnp.int32)
    bound = math.sqrt(6.0 / (C + E))
    weight = jax.random.uniform(kw, (C, E), minval=-bound, maxval=bound,
                                dtype=jnp.float32)

    out = jax.block_until_ready(
        arcface_margin(xs, ys, weight, s=s, m=m, training=True,
                       compute_dtype=jnp.float32))
    ref = _reference(xs, ys, weight, s, m, training=True)
    if not jnp.allclose(out, ref, atol=1e-4, rtol=1e-4):
        raise AssertionError("Pallas ArcfaceMargin (train, f32) mismatch")

    # Case 2: eval mode — no ys DMA, no margin, no scale.
    out_eval = jax.block_until_ready(
        arcface_margin(xs, None, weight, s=s, m=m, training=False,
                       compute_dtype=jnp.float32))
    ref_eval = _reference(xs, ys, weight, s, m, training=False)
    if not jnp.allclose(out_eval, ref_eval, atol=1e-5, rtol=1e-5):
        raise AssertionError("Pallas ArcfaceMargin (eval) mismatch")

    # Case 3: non-power-of-two s exercises the in-kernel scale multiply path.
    out_s = jax.block_until_ready(
        arcface_margin(xs, ys, weight, s=48.0, m=m, training=True,
                       compute_dtype=jnp.float32))
    ref_s = _reference(xs, ys, weight, 48.0, m, training=True)
    if not jnp.allclose(out_s, ref_s, atol=1e-4, rtol=1e-4):
        raise AssertionError("Pallas ArcfaceMargin (non-pow2 s) mismatch")

    # Case 4: batch + class tiling with the default bf16 operands and the
    # in-kernel per-class-tile weight normalization (global column offset,
    # pl.when guard, "arbitrary" inner axis).
    C2 = 256
    bound2 = math.sqrt(6.0 / (C2 + E))
    weight2 = jax.random.uniform(kw2, (C2, E), minval=-bound2, maxval=bound2,
                                 dtype=jnp.float32)
    ys_big = jax.random.randint(ky, (B,), 0, C2, dtype=jnp.int32)
    ref2 = _reference(xs, ys_big, weight2, s, m, training=True)

    out2 = jax.block_until_ready(
        arcface_margin(xs, ys_big, weight2, s=s, m=m, training=True,
                       tb=8, tc=128))
    if not jnp.allclose(out2, ref2, atol=1.0, rtol=5e-2):
        raise AssertionError("Pallas ArcfaceMargin (tiled, bf16) mismatch")

    # Case 5: pre-normalized (frozen) weight path + bf16 output writeback.
    out3 = jax.block_until_ready(
        arcface_margin(xs, ys_big, weight2, s=s, m=m, training=True,
                       tb=8, tc=128, prenormalize_weight=True,
                       out_dtype=jnp.bfloat16))
    if not jnp.allclose(out3.astype(jnp.float32), ref2, atol=1.5, rtol=5e-2):
        raise AssertionError("Pallas ArcfaceMargin (prenorm, bf16 out) mismatch")

    print("KERNEL_OK")
</pallas_src>

<mosaic_0001>
module attributes {stable_mosaic.version = 11 : i64} {
  func.func @_arcface_kernel(%arg0: i32, %arg1: i32, %arg2: memref<16x32xf32, #tpu.memory_space<vmem>>, %arg3: memref<16x1xi32, #tpu.memory_space<vmem>>, %arg4: memref<16x32xf32, #tpu.memory_space<vmem>>, %arg5: memref<16x16xf32, #tpu.memory_space<vmem>>, %arg6: memref<16x32xf32, #tpu.memory_space<vmem>>) attributes {dimension_semantics = [#tpu.dimension_semantics<parallel>, #tpu.dimension_semantics<arbitrary>], iteration_bounds = array<i64: 1, 1>, scalar_prefetch = 0 : i64, scratch_operands = 1 : i64, tpu.core_type = #tpu.core_type<tc>, window_params = [{transform_indices = @transform_0, window_bounds = array<i64: 16, 32>}, {transform_indices = @transform_1, window_bounds = array<i64: 16, 1>}, {transform_indices = @transform_2, window_bounds = array<i64: 16, 32>}, {transform_indices = @transform_3, window_bounds = array<i64: 16, 16>}]} {
    %c0_i32 = arith.constant 0 : i32
    %0 = arith.cmpi eq, %arg1, %c0_i32 : i32
    %1 = arith.extui %0 : i1 to i32
    %c0_i32_0 = arith.constant 0 : i32
    %2 = arith.cmpi ne, %1, %c0_i32_0 : i32
    scf.if %2 {
      %c0_19 = arith.constant 0 : index
      %c0_20 = arith.constant 0 : index
      %43 = vector.load %arg4[%c0_19, %c0_20] : memref<16x32xf32, #tpu.memory_space<vmem>>, vector<16x32xf32>
      %44 = arith.mulf %43, %43 : vector<16x32xf32>
      %cst_21 = arith.constant dense<0.000000e+00> : vector<16xf32>
      %45 = vector.multi_reduction <add>, %44, %cst_21 [1] : vector<16x32xf32> to vector<16xf32>
      %46 = vector.shape_cast %45 : vector<16xf32> to vector<16x1xf32>
      %cst_22 = arith.constant 1.000000e-24 : f32
      %47 = vector.broadcast %cst_22 : f32 to vector<16x1xf32>
      %48 = arith.maximumf %46, %47 : vector<16x1xf32>
      %49 = math.rsqrt %48 : vector<16x1xf32>
      %50 = vector.broadcast %49 : vector<16x1xf32> to vector<16x32xf32>
      %51 = arith.mulf %43, %50 : vector<16x32xf32>
      %c0_23 = arith.constant 0 : index
      %c0_24 = arith.constant 0 : index
      %52 = vector.load %arg6[%c0_23, %c0_24] : memref<16x32xf32, #tpu.memory_space<vmem>>, vector<16x32xf32>
      tpu.vector_store %arg6[%c0_23, %c0_24], %51 {strides = array<i32>} : memref<16x32xf32, #tpu.memory_space<vmem>>, vector<16x32xf32>,
    } else {
    }
    %c0 = arith.constant 0 : index
    %c0_1 = arith.constant 0 : index
    %3 = vector.load %arg6[%c0, %c0_1] : memref<16x32xf32, #tpu.memory_space<vmem>>, vector<16x32xf32>
    %c0_2 = arith.constant 0 : index
    %c0_3 = arith.constant 0 : index
    %4 = vector.load %arg2[%c0_2, %c0_3] : memref<16x32xf32, #tpu.memory_space<vmem>>, vector<16x32xf32>
    %cst = arith.constant dense<0.000000e+00> : vector<16x16xf32>
    %5 = tpu.matmul %4, %3, %cst {dimension_numbers = #tpu.dot_dimension_numbers<[1], [1], [0], [0], [0, 0, 1, 0], [], []>} : vector<16x32xf32>, vector<16x32xf32>, vector<16x16xf32> -> vector<16x16xf32>
    %c16_i32 = arith.constant 16 : i32
    %6 = arith.muli %arg0, %c16_i32 : i32
    %7 = tpu.iota {dimensions = array<i32: 1>} : vector<16x16xi32>
    %c0_4 = arith.constant 0 : index
    %c0_5 = arith.constant 0 : index
    %8 = vector.load %arg3[%c0_4, %c0_5] : memref<16x1xi32, #tpu.memory_space<vmem>>, vector<16x1xi32>
    %9 = vector.broadcast %6 : i32 to vector<16x1xi32>
    %10 = arith.subi %8, %9 : vector<16x1xi32>
    %11 = vector.broadcast %10 : vector<16x1xi32> to vector<16x16xi32>
    %12 = arith.cmpi eq, %7, %11 : vector<16x16xi32>
    %cst_6 = arith.constant 0.000000e+00 : f32
    %13 = vector.broadcast %cst_6 : f32 to vector<16x16xf32>
    %14 = arith.select %12, %5, %13 : vector<16x16xi1>, vector<16x16xf32>
    %cst_7 = arith.constant dense<0.000000e+00> : vector<16xf32>
    %15 = vector.multi_reduction <add>, %14, %cst_7 [1] : vector<16x16xf32> to vector<16xf32>
    %16 = vector.shape_cast %15 : vector<16xf32> to vector<16x1xf32>
    %cst_8 = arith.constant 1.562500e-02 : f32
    %17 = vector.broadcast %cst_8 : f32 to vector<16x1xf32>
    %18 = arith.mulf %16, %17 : vector<16x1xf32>
    %cst_9 = arith.constant -1.000000e+00 : f32
    %cst_10 = arith.constant 1.000000e+00 : f32
    %19 = vector.broadcast %cst_9 : f32 to vector<16x1xf32>
    %20 = arith.maximumf %19, %18 : vector<16x1xf32>
    %21 = vector.broadcast %cst_10 : f32 to vector<16x1xf32>
    %22 = arith.minimumf %21, %20 : vector<16x1xf32>
    %cst_11 = arith.constant 0.955336511 : f32
    %23 = vector.broadcast %cst_11 : f32 to vector<16x1xf32>
    %24 = arith.mulf %22, %23 : vector<16x1xf32>
    %25 = arith.mulf %22, %22 : vector<16x1xf32>
    %cst_12 = arith.constant 1.000000e+00 : f32
    %26 = vector.broadcast %cst_12 : f32 to vector<16x1xf32>
    %27 = arith.subf %26, %25 : vector<16x1xf32>
    %cst_13 = arith.constant 0.000000e+00 : f32
    %28 = vector.broadcast %cst_13 : f32 to vector<16x1xf32>
    %29 = arith.maximumf %27, %28 : vector<16x1xf32>
    %30 = math.sqrt %29 : vector<16x1xf32>
    %cst_14 = arith.constant 0.295520216 : f32
    %31 = vector.broadcast %cst_14 : f32 to vector<16x1xf32>
    %32 = arith.mulf %31, %30 : vector<16x1xf32>
    %33 = arith.subf %24, %32 : vector<16x1xf32>
    %cst_15 = arith.constant 6.400000e+01 : f32
    %34 = vector.broadcast %cst_15 : f32 to vector<16x1xf32>
    %35 = arith.mulf %34, %33 : vector<16x1xf32>
    %36 = arith.subf %35, %16 : vector<16x1xf32>
    %cst_16 = arith.constant 0.000000e+00 : f32
    %37 = vector.shape_cast %36 : vector<16x1xf32> to vector<16x1xf32>
    %38 = vector.broadcast %37 : vector<16x1xf32> to vector<16x16xf32>
    %39 = vector.broadcast %cst_16 : f32 to vector<16x16xf32>
    %40 = arith.select %12, %38, %39 : vector<16x16xi1>, vector<16x16xf32>
    %41 = arith.addf %5, %40 : vector<16x16xf32>
    %c0_17 = arith.constant 0 : index
    %c0_18 = arith.constant 0 : index
    %42 = vector.load %arg5[%c0_17, %c0_18] : memref<16x16xf32, #tpu.memory_space<vmem>>, vector<16x16xf32>
    tpu.vector_store %arg5[%c0_17, %c0_18], %41 {strides = array<i32>} : memref<16x16xf32, #tpu.memory_space<vmem>>, vector<16x16xf32>,
    return
  }
  func.func @transform_0(%arg0: i32, %arg1: i32) -> (i32, i32) {
    %c0_i32 = arith.constant 0 : i32
    %c0_i32_0 = arith.constant 0 : i32
    return %arg1, %c0_i32 : i32, i32
  }
  func.func @transform_1(%arg0: i32, %arg1: i32) -> (i32, i32) {
    %c0_i32 = arith.constant 0 : i32
    %c0_i32_0 = arith.constant 0 : i32
    return %arg1, %c0_i32 : i32, i32
  }
  func.func @transform_2(%arg0: i32, %arg1: i32) -> (i32, i32) {
    %c0_i32 = arith.constant 0 : i32
    %c0_i32_0 = arith.constant 0 : i32
    return %arg0, %c0_i32 : i32, i32
  }
  func.func @transform_3(%arg0: i32, %arg1: i32) -> (i32, i32) {
    %c0_i32 = arith.constant 0 : i32
    return %arg1, %arg0 : i32, i32
  }
}

</mosaic_0001>

<bundles_post_ra>
// kernel: tpu_custom_call.1
= control target key start
LH: loop header
LB: loop body
LE: loop exit
PB: predicated region body
PF: predicated region fallthrough
CT: control target
= control target key end

     0   :  { %8 = vsyncpa [#allocation4], 0  ;;  %s371_s0 = inlined_call_operand.vmem [shape: f32[16,32], index: 0, kind: input, shape index: {}]   ;;  %s372_s1 = inlined_call_operand.vmem [shape: s32[16,1], index: 1, kind: input, shape index: {}]   ;;  %s373_s2 = inlined_call_operand.hbm [shape: f32[16,32], index: 2, kind: input, shape index: {}]   ;;  %s374_s3 = inlined_call_operand.hbm [shape: f32[16,16], index: 3, kind: output, shape index: {}]  }
   0x1   :  { %9 = vsyncpa [#allocation5], 0  ;;  %s304_s12 = smov [#allocation3]  }
   0x2   :  { %s19_s13 = sshll.u32 %s304_s12, 4  ;;  %s20_s13 = int_to_ptr.vmem [resolvable:$true] %s19_s13 }
   0x3   :  { %s268_s14 = scalar_lea.vmem %s20_s13, 256  ;;  %p273_p1 = scmp.lt.s32.totalorder %s20_s13, %s20_s13 }
   0x4   :  { %p269_p0 = scmp.ne.s32.totalorder %s20_s13, %s268_s14  ;;  %p274_p2 = scmp.lt.s32.totalorder %s268_s14, %s268_s14 }
   0x6   :  { %p275_p3 = por %p274_p2, %p273_p1 }
   0x8   :  { %p276_p4 = pnand %p275_p3, %p269_p0 }
   0xa   :  { %279 = shalt.err (!%p276_p4)
}
   0xb   :  { %s305_s15 = smov 128   ;;  %s306_s16 = smov 8  }
   0xc   :  { %25 = dma.hbm_to_vmem [thread:$0]  %s373_s2, 256, %s20_s13, [#allocation4], %s305_s15, %s305_s15, %s306_s16  }
   0xd   :  { %300 = dma.done.wait [#allocation4], 256  }
   0xe   :  { %301 = vsyncadd [#allocation4], 4294967040  ;;  %v34_v0 = vld [vmem:[#allocation3 + $0x8] sm:$0xff]  ;;  %vm37_vm0 = vcmask 261120   ;;  %v33_v1 = vld [vmem:[#allocation3] sm:$0xff]  ;;  %v307_v8 = vmov 0   ;;  %v145_v22 = vlaneseq }
   0xf   :  { %v36_v2 = vmul.f32 %v34_v0, %v34_v0  ;;  %v35_v3 = vmul.f32 %v33_v1, %v33_v1  ;;  %v54_v6 = vld [vmem:[%s371_s0] sm:$0xff]  ;;  %250 = vset.pattern.permute.xlu1 %v307_v8  ;;  %251 = vset.pattern.permute.xlu0 %v307_v8  ;;  %v148_v9 = vld [vmem:[%s372_s1 + $0x8] sm:$0xff]  ;;  %vm162_vm1 = vcmask 130048  }
  0x10   :  { %242 = vmatprep.mubr.msk.f32.mxu0 %vm37_vm0, %v54_v6  ;;  %v147_v7 = vld [vmem:[%s372_s1] sm:$0xff]  ;;  %v55_v20 = vld [vmem:[%s371_s0 + $0x8] sm:$0xff]  ;;  %v146_v23 = vand.u32 127, %v145_v22  ;;  %s308_s0 = smov [#allocation6]  }
  0x11   :  { %v41_v4 = vsel %vm37_vm0, %v36_v2, 0.0  ;;  %v38_v5 = vsel %vm37_vm0, %v35_v3, 0.0  ;;  %153 = vperm.xlu1 %250, %v147_v7   ;;  %s216_s25 = sshll.u32 %s308_s0, 4  ;;  %s217_s25 = int_to_ptr.vmem [resolvable:$true] %s216_s25 }
  0x12   :  { %42 = vadd.xlane.f32.xlu0 %v41_v4  ;;  %s280_s26 = scalar_lea.vmem %s217_s25, 256  ;;  %p285_p6 = scmp.lt.s32.totalorder %s217_s25, %s217_s25 }
  0x13   :  { %p281_p5 = scmp.ne.s32.totalorder %s217_s25, %s280_s26  ;;  %p286_p7 = scmp.lt.s32.totalorder %s280_s26, %s280_s26 }
  0x15   :  { %156 = vperm.xlu1 %250, %v148_v9   ;;  %p287_p8 = por %p286_p7, %p285_p6 }
  0x16   :  { %39 = vadd.xlane.f32.xlu0 %v38_v5 }
  0x17   :  { %p288_p9 = pnand %p287_p8, %p281_p5 }
  0x8c   :  { %v154_v21 = vpop.permute.xlu1 %153 }
  0x8d   :  { %vm158_vm3 = vcmp.eq.s32.totalorder %v146_v23, %v154_v21 }
  0x90   :  { %v157_v24 = vpop.permute.xlu1 %156 }
  0x91   :  { %vm159_vm2 = vcmp.eq.s32.totalorder %v146_v23, %v157_v24 }
  0x9b   :  { %v43_v10 = vpop.xlane.xlu0 %42 }
  0x9c   :  { %v45_v11 = vmax.f32 %v43_v10, 1e-24 }
  0x9e   :  { %252 = vrsqrt.f32 %v45_v11 }
  0x9f   :  { %v40_v12 = vpop.xlane.xlu0 %39 }
  0xa0   :  { %v44_v13 = vmax.f32 %v40_v12, 1e-24 }
  0xa2   :  { %254 = vrsqrt.f32 %v44_v13 }
  0xab   :  { %v253_v14 = vpop.eup %252 }
  0xac   :  { %v49_v15 = vmul.f32 %v253_v14, %v34_v0 }
  0xae   :  { %51 = vst.msk [vmem:[#allocation2 + $0x8] sm:$0xff] %vm37_vm0, %v49_v15 }
  0xaf   :  { %v255_v16 = vpop.eup %254 }
  0xb0   :  { %v48_v17 = vmul.f32 %v255_v16, %v33_v1 }
  0xb2   :  { %50 = vst.msk [vmem:[#allocation2] sm:$0xff] %vm37_vm0, %v48_v17 }
  0xb5   :  { %v53_v18 = vld [vmem:[#allocation2 + $0x8] sm:$0xff] }
  0xb6   :  { %238 = vmatprep.subr.msk.mxu0 %vm37_vm0, %v53_v18 }
  0xb7   :  { %239 = vmatpush3.xpose.msk.msra.mxu0 %vm37_vm0, %v53_v18 }
  0xb9   :  { %v52_v19 = vld [vmem:[#allocation2] sm:$0xff] }
  0xba   :  { %240 = vmatprep.subr.msk.mxu0 %vm37_vm0, %v52_v19 }
  0xbb   :  { %241 = vmatpush3.xpose.msk.msra.mxu0 %vm37_vm0, %v52_v19 }
  0xbe   :  { %243 = vmatmul.mubr.msk.f32.vlgmr.msra.gmra.mxu0 %vm37_vm0, %v55_v20 }
 0x17e   :  { %v244_v25 = vpop.f32.mrf.mxu0 }
 0x17f   :  { %v161_v26 = vsel %vm159_vm2, %v244_v25, 0.0 }
 0x180   :  { %v135_v27 = vpop.f32.mrf.mxu0  ;;  %v166_v28 = vsel %vm162_vm1, %v161_v26, 0.0 }
 0x181   :  { %v160_v29 = vsel %vm158_vm3, %v135_v27, 0.0  ;;  %167 = vadd.xlane.f32.xlu1 %v166_v28 }
 0x182   :  { %v163_v30 = vsel %vm162_vm1, %v160_v29, 0.0 }
 0x183   :  { %164 = vadd.xlane.f32.xlu0 %v163_v30 }
 0x20a   :  { %v168_v31 = vpop.xlane.xlu1 %167 }
 0x20b   :  { %v170_v32 = vmul.f32 0.015625, %v168_v31 }
 0x20c   :  { %v165_v33 = vpop.xlane.xlu0 %164 }
 0x20d   :  { %v233_v34 = vclamps-f32 %v170_v32, 1.0  ;;  %v169_v35 = vmul.f32 0.015625, %v165_v33 }
 0x20f   :  { %v178_v36 = vmul.f32 %v233_v34, %v233_v34  ;;  %v232_v37 = vclamps-f32 %v169_v35, 1.0  ;;  %v176_v50 = vmul.f32 0.9553365, %v233_v34 }
 0x211   :  { %v180_v38 = vsub.f32 1.0, %v178_v36  ;;  %v177_v39 = vmul.f32 %v232_v37, %v232_v37  ;;  %v175_v56 = vmul.f32 0.9553365, %v232_v37 }
 0x213   :  { %v182_v40 = vmax.f32 %v180_v38, 0.0  ;;  %v179_v41 = vsub.f32 1.0, %v177_v39 }
 0x215   :  { %256 = vrsqrt.f32 %v182_v40  ;;  %v181_v42 = vmax.f32 %v179_v41, 0.0  ;;  %vm192_vm4 = vcmp.eq.f32.partialorder %v182_v40, inf  ;;  %v195_v45 = vand.u32 2147483648, %v182_v40 }
 0x216   :  { %vm194_vm5 = vcmp.eq.f32.partialorder %v182_v40, 0.0 }
 0x217   :  { %258 = vrsqrt.f32 %v181_v42  ;;  %vm185_vm6 = vcmp.eq.f32.partialorder %v181_v42, inf  ;;  %v188_v52 = vand.u32 2147483648, %v181_v42  ;;  %vm187_vm7 = vcmp.eq.f32.partialorder %v181_v42, 0.0 }
 0x222   :  { %v257_v43 = vpop.eup %256 }
 0x223   :  { %v191_v44 = vmul.f32 %v257_v43, %v182_v40 }
 0x224   :  { %v259_v46 = vpop.eup %258 }
 0x225   :  { %v193_v47 = vsel %vm192_vm4, %v182_v40, %v191_v44  ;;  %v184_v49 = vmul.f32 %v259_v46, %v181_v42 }
 0x226   :  { %v196_v48 = vsel %vm194_vm5, %v195_v45, %v193_v47 }
 0x227   :  { %v198_v51 = vmul.f32 0.29552022, %v196_v48  ;;  %v186_v53 = vsel %vm185_vm6, %v181_v42, %v184_v49 }
 0x228   :  { %v189_v55 = vsel %vm187_vm7, %v188_v52, %v186_v53 }
 0x229   :  { %v200_v54 = vsub.f32 %v176_v50, %v198_v51  ;;  %v197_v57 = vmul.f32 0.29552022, %v189_v55 }
 0x22b   :  { %v202_v58 = vmul.f32 64.0, %v200_v54  ;;  %v199_v59 = vsub.f32 %v175_v56, %v197_v57 }
 0x22d   :  { %v204_v60 = vsub.f32 %v202_v58, %v168_v31  ;;  %v201_v61 = vmul.f32 64.0, %v199_v59 }
 0x22f   :  { %v206_v62 = vsel %vm159_vm2, %v204_v60, 0.0  ;;  %v203_v0 = vsub.f32 %v201_v61, %v165_v33 }
 0x230   :  { %v208_v63 = vadd.f32 %v244_v25, %v206_v62 }
 0x231   :  { %v205_v1 = vsel %vm158_vm3, %v203_v0, 0.0 }
 0x232   :  { %210 = vst.msk [vmem:[#allocation6 + $0x8] sm:$0xff] %vm162_vm1, %v208_v63  ;;  %v207_v2 = vadd.f32 %v205_v1, %v135_v27 }
 0x234   :  { %209 = vst.msk [vmem:[#allocation6] sm:$0xff] %vm162_vm1, %v207_v2 }
 0x235   :  { %291 = shalt.err (!%p288_p9)
}
 0x236   :  { %222 = dma.vmem_to_hbm [thread:$0]  %s217_s25, 256, %s374_s3, [#allocation5], %s305_s15, %s305_s15, %s306_s16  }
 0x237   :  { %302 = dma.done.wait [#allocation5], 256  }
 0x238   :  { %303 = vsyncadd [#allocation5], 4294967040 }
 0x239   :  { %226 = vsyncpa [#allocation4], 1 }
 0x23a   :  { %227 = vsyncpa [#allocation5], 1 }

</bundles_post_ra>
